<compile_context>
chip_gen: v7x
topology: tpu7x:2x2x1
jax: 0.10.0
libtpu: 0.0.40
codegen_flags: <defaults>
</compile_context>

<pallas_src>
import functools

import jax
import jax.numpy as jnp
from jax.experimental import pallas as pl
from jax.experimental.pallas import tpu as pltpu


# --------------------------------------------------------------------------- #
# Kernel
# --------------------------------------------------------------------------- #
def _mlp_kernel(x_ref, w1_ref, b1_ref, w2_ref, b2_ref, o_ref):
    """out = relu(x @ w1 + b1) @ w2 + b2 on one row tile.

    Weights arrive pre-transposed / block-diagonalized and already cast to the
    MXU compute dtype (bf16).  Both matmuls accumulate in f32 on the MXU; the
    hidden slab is narrowed to bf16 at the relu (halves the biggest VMEM temp
    and its vst/vld traffic).  Biases stay f32 and are added to the f32
    accumulator.
    """
    cdt = w1_ref.dtype                                    # compute dtype (bf16)
    h = jnp.dot(x_ref[...].astype(cdt), w1_ref[...],
                preferred_element_type=jnp.float32)
    h = jnp.maximum(h + b1_ref[...], 0.0).astype(cdt)     # bf16 hidden slab
    y = jnp.dot(h, w2_ref[...], preferred_element_type=jnp.float32)
    o_ref[...] = (y + b2_ref[...]).astype(o_ref.dtype)


# --------------------------------------------------------------------------- #
# Per-generation budgets / tiling
# --------------------------------------------------------------------------- #
def _tpu_budgets():
    """(tile_budget_bytes, vmem_limit_clamp_bytes, num_tensorcores)."""
    try:
        kind = jax.devices()[0].device_kind.lower()
    except Exception:
        kind = ""
    if "v7" in kind:
        # 64 MiB VMEM per TC, 2 TCs share the "parallel" grid axis.
        return 24 * 2**20, 48 * 2**20, 2
    if "v4" in kind or "v5p" in kind or kind.endswith(" v5"):
        # Megacore chips with large VMEM.
        return 40 * 2**20, 96 * 2**20, 2
    if "v5" in kind or "v6" in kind:
        # v5e / v6e: 128 MiB VMEM, single TensorCore (serial grid).
        return 44 * 2**20, 100 * 2**20, 1
    # Unknown device: stay conservative.
    return 24 * 2**20, 48 * 2**20, 1


def _row_tile(num_rows, requested, num_cores):
    """Row-tile: multiple of 8 (sublane) or the full extent, <= requested.

    Single-TC chips get the largest tile that fits (the grid is a serial loop,
    so extra steps are pure per-step overhead); 2-TC chips (v7x megacore) get
    >= 2 grid steps with a preferably even count so neither core idles.
    """
    if num_rows <= 8:
        return num_rows
    if num_cores <= 1:
        if num_rows <= requested:
            return num_rows                     # single full-extent block
        return max(8, (requested // 8) * 8)
    requested = max(8, (requested // 8) * 8)
    half = 8 * pl.cdiv(pl.cdiv(num_rows, 2), 8)
    tile = min(requested, half)
    steps = pl.cdiv(num_rows, tile)
    if steps % 2:                               # try for an even step count
        even_tile = 8 * pl.cdiv(pl.cdiv(num_rows, steps + 1), 8)
        if pl.cdiv(num_rows, even_tile) % 2 == 0:
            tile = even_tile
    return tile


# --------------------------------------------------------------------------- #
# pallas_call wrapper on the flattened 2-D problem
# --------------------------------------------------------------------------- #
def _pallas_mlp_2d(xm, w1t, b1r, w2t, b2r, *, block_rows):
    """xm: (R, Kin); w1t: (Kin, Kmid) compute-dtype; b1r: (1, Kmid) f32;
    w2t: (Kmid, Kout) compute-dtype; b2r: (1, Kout) f32 -> (R, Kout) xm.dtype."""
    r, kin = xm.shape
    kmid = w1t.shape[1]
    kout = w2t.shape[1]
    tile_budget, vmem_clamp, num_cores = _tpu_budgets()

    x_bytes = xm.dtype.itemsize
    w_bytes = ((w1t.size + w2t.size) * w1t.dtype.itemsize
               + (b1r.size + b2r.size) * b1r.dtype.itemsize)
    # Bytes one row keeps live: double-buffered x/y tiles + the f32 matmul
    # accumulator of the hidden slab + its bf16 copy.
    per_row = (2 * kin * x_bytes + 2 * kout * x_bytes
               + kmid * 4 + kmid * w1t.dtype.itemsize)
    budget_rows = max(8, (tile_budget - 2 * w_bytes) // per_row)
    bm = _row_tile(r, min(block_rows, budget_rows), num_cores)
    grid = (pl.cdiv(r, bm),)            # ragged last block is masked by Pallas

    # Honest cost: flops the MXU actually executes on the (padded, block-diag)
    # shapes, not just the per-channel "useful" flops.
    cost = pl.CostEstimate(
        flops=2 * r * (kin * kmid + kmid * kout),
        transcendentals=0,
        bytes_accessed=(xm.size + r * kout) * x_bytes + w_bytes)

    vmem_est = bm * per_row + 2 * w_bytes
    vmem_limit = int(min(vmem_clamp, max(16 * 2**20, 2 * vmem_est)))

    # TODO(synk): the four weight/bias operands have constant index_maps;
    # pipeline_mode=pl.Buffered(1) would drop their second buffer (~0.5 MiB)
    # once that kwarg is universally available.
    return pl.pallas_call(
        _mlp_kernel,
        out_shape=jax.ShapeDtypeStruct((r, kout), xm.dtype),
        grid=grid,
        in_specs=[
            pl.BlockSpec((bm, kin), lambda i: (i, 0)),
            pl.BlockSpec((kin, kmid), lambda i: (0, 0)),
            pl.BlockSpec((1, kmid), lambda i: (0, 0)),
            pl.BlockSpec((kmid, kout), lambda i: (0, 0)),
            pl.BlockSpec((1, kout), lambda i: (0, 0)),
        ],
        out_specs=pl.BlockSpec((bm, kout), lambda i: (i, 0)),
        compiler_params=pltpu.CompilerParams(
            dimension_semantics=("parallel",),
            vmem_limit_bytes=vmem_limit),
        cost_estimate=cost,
    )(xm, w1t, b1r, w2t, b2r)


# --------------------------------------------------------------------------- #
# Weight preparation (hoisted, one-time) and apply
# --------------------------------------------------------------------------- #
def prepare_mlp_params(w1, b1, w2, b2, *, compute_dtype=jnp.bfloat16):
    """One-time kernel-layout prep for torch.nn.Linear parameters.

    w1: (C_mid, C_in), b1: (C_mid,), w2: (C_out, C_mid), b2: (C_out,).
    Returns ((w1k, b1k, w2k, b2k), g) where g is the number of original rows
    packed per 128-lane row (g == 1 means the generic, non-packed layout).
    Matmul operands are cast to `compute_dtype` (bf16) here, once.
    """
    c_mid, c_in = w1.shape
    c_out = w2.shape[0]
    if 0 < c_in <= 128 and 128 % c_in == 0:
        g = 128 // c_in
        eye = jnp.eye(g, dtype=jnp.float32)
        w1k = jnp.kron(eye, jnp.asarray(w1, jnp.float32).T).astype(compute_dtype)
        w2k = jnp.kron(eye, jnp.asarray(w2, jnp.float32).T).astype(compute_dtype)
        b1k = jnp.tile(jnp.asarray(b1, jnp.float32), g).reshape(1, g * c_mid)
        b2k = jnp.tile(jnp.asarray(b2, jnp.float32), g).reshape(1, g * c_out)
        return (w1k, b1k, w2k, b2k), g
    # Generic fallback for channel counts that do not pack into 128 lanes.
    # TODO(synk): pad C_out up to a multiple of 128 here so the store stays
    # lane-dense if such channel counts are ever used.
    return ((jnp.asarray(w1, compute_dtype).T,
             jnp.asarray(b1, jnp.float32).reshape(1, c_mid),
             jnp.asarray(w2, compute_dtype).T,
             jnp.asarray(b2, jnp.float32).reshape(1, c_out)), 1)


def mlp_apply(x, weights, *, g, block_rows=4096):
    """x: (..., C_in); weights from prepare_mlp_params.  Returns (..., C_out)
    = relu(x @ W1^T + b1) @ W2^T + b2 in x.dtype."""
    w1k, b1k, w2k, b2k = weights
    orig_shape = x.shape
    c_in = orig_shape[-1]
    c_out = w2k.shape[1] // g

    xm = x.reshape(-1, c_in)
    m = xm.shape[0]
    m_pad = m
    if g > 1 and m % g:
        # TODO(synk): handle the ragged tail with a masked second call instead
        # of a full-array pad (unreachable for FNO/Darcy grids, where B*H*W is
        # a multiple of 32).
        m_pad = pl.cdiv(m, g) * g
        xm = jnp.pad(xm, ((0, m_pad - m), (0, 0)))

    xp = xm.reshape(m_pad // g, g * c_in)          # free reshape: 128 lanes
    yp = _pallas_mlp_2d(xp, w1k, b1k, w2k, b2k, block_rows=block_rows)
    out = yp.reshape(m_pad, c_out)
    if m_pad != m:
        out = out[:m]
    return out.reshape(*orig_shape[:-1], c_out)


def mlp_pallas(x, w1, b1, w2, b2, *, compute_dtype=jnp.bfloat16,
               block_rows=4096):
    """Convenience one-shot wrapper (prep + apply).  For repeated layer calls,
    hoist prepare_mlp_params out and call mlp_apply directly."""
    weights, g = prepare_mlp_params(w1, b1, w2, b2, compute_dtype=compute_dtype)
    return mlp_apply(x, weights, g=g, block_rows=block_rows)


def _init_linear(key, out_features, in_features, dtype=jnp.float32):
    """Deterministic init matching torch.nn.Linear's default (uniform with
    bound = 1/sqrt(fan_in) for both weight and bias)."""
    kw, kb = jax.random.split(key)
    bound = 1.0 / jnp.sqrt(jnp.asarray(in_features, dtype))
    w = jax.random.uniform(kw, (out_features, in_features), dtype,
                           minval=-bound, maxval=bound)
    b = jax.random.uniform(kb, (out_features,), dtype,
                           minval=-bound, maxval=bound)
    return w, b


if __name__ == "__main__":
    # MLP(in_channels=4, out_channels=4, mid_channels=32) applied to
    # x of shape (2, 16, 16, 4)  (nn.Linear acts on the last axis).
    in_channels, mid_channels, out_channels = 4, 32, 4
    key = jax.random.PRNGKey(0)
    k_x, k_l1, k_l2 = jax.random.split(key, 3)

    x = jax.random.normal(k_x, (2, 16, 16, in_channels), jnp.float32)
    w1, b1 = _init_linear(k_l1, mid_channels, in_channels)
    w2, b2 = _init_linear(k_l2, out_channels, mid_channels)

    # One-time weight prep (transpose + kron block-diag + bf16 cast), hoisted
    # out of the per-call path so repeated FNO layer calls only run the kernel.
    weights, g = prepare_mlp_params(w1, b1, w2, b2, compute_dtype=jnp.bfloat16)
    weights = jax.block_until_ready(weights)

    run = jax.jit(functools.partial(mlp_apply, g=g))
    y = jax.block_until_ready(run(x, weights))

    # Reference 1: mirrors the kernel's bf16-operand / f32-accumulate numerics.
    xb = x.astype(jnp.bfloat16).astype(jnp.float32)
    w1b = w1.astype(jnp.bfloat16).astype(jnp.float32)
    w2b = w2.astype(jnp.bfloat16).astype(jnp.float32)
    h_ref = jnp.maximum(jnp.einsum("bhwc,mc->bhwm", xb, w1b) + b1, 0.0)
    h_ref = h_ref.astype(jnp.bfloat16).astype(jnp.float32)
    y_ref = jnp.einsum("bhwm,om->bhwo", h_ref, w2b) + b2
    assert y.shape == y_ref.shape == (2, 16, 16, out_channels)
    assert jnp.allclose(y, y_ref, atol=2e-3, rtol=2e-3), "mismatch vs bf16 ref"

    # Reference 2: full-f32 math; bf16 MXU operands => relaxed tolerance.
    h32 = jnp.maximum(jnp.einsum("bhwc,mc->bhwm", x, w1) + b1, 0.0)
    y32 = jnp.einsum("bhwm,om->bhwo", h32, w2) + b2
    assert jnp.allclose(y, y32, atol=5e-2, rtol=5e-2), "mismatch vs f32 ref"

    print("KERNEL_OK")
</pallas_src>

<mosaic_0001>
module attributes {stable_mosaic.version = 11 : i64} {
  func.func @_mlp_kernel(%arg0: i32, %arg1: memref<16x128xf32, #tpu.memory_space<vmem>>, %arg2: memref<128x1024xbf16, #tpu.memory_space<vmem>>, %arg3: memref<1x1024xf32, #tpu.memory_space<vmem>>, %arg4: memref<1024x128xbf16, #tpu.memory_space<vmem>>, %arg5: memref<1x128xf32, #tpu.memory_space<vmem>>, %arg6: memref<16x128xf32, #tpu.memory_space<vmem>>) attributes {dimension_semantics = [#tpu.dimension_semantics<parallel>], iteration_bounds = array<i64: 1>, scalar_prefetch = 0 : i64, scratch_operands = 0 : i64, tpu.core_type = #tpu.core_type<tc>, window_params = [{transform_indices = @transform_0, window_bounds = array<i64: 16, 128>}, {pipeline_mode = #tpu.pipeline_mode<synchronous>, transform_indices = @transform_1, window_bounds = array<i64: 128, 1024>}, {pipeline_mode = #tpu.pipeline_mode<synchronous>, transform_indices = @transform_2, window_bounds = array<i64: 1, 1024>}, {pipeline_mode = #tpu.pipeline_mode<synchronous>, transform_indices = @transform_3, window_bounds = array<i64: 1024, 128>}, {pipeline_mode = #tpu.pipeline_mode<synchronous>, transform_indices = @transform_4, window_bounds = array<i64: 1, 128>}, {transform_indices = @transform_5, window_bounds = array<i64: 16, 128>}]} {
    %c0 = arith.constant 0 : index
    %c0_0 = arith.constant 0 : index
    %0 = vector.load %arg1[%c0, %c0_0] : memref<16x128xf32, #tpu.memory_space<vmem>>, vector<16x128xf32>
    %1 = arith.truncf %0 : vector<16x128xf32> to vector<16x128xbf16>
    %c0_1 = arith.constant 0 : index
    %c0_2 = arith.constant 0 : index
    %2 = vector.load %arg2[%c0_1, %c0_2] : memref<128x1024xbf16, #tpu.memory_space<vmem>>, vector<128x1024xbf16>
    %cst = arith.constant dense<0.000000e+00> : vector<16x1024xf32>
    %3 = tpu.matmul %1, %2, %cst {dimension_numbers = #tpu.dot_dimension_numbers<[1], [0], [0], [1], [0, 0, 1, 1], [], []>} : vector<16x128xbf16>, vector<128x1024xbf16>, vector<16x1024xf32> -> vector<16x1024xf32>
    %c0_3 = arith.constant 0 : index
    %c0_4 = arith.constant 0 : index
    %4 = vector.load %arg3[%c0_3, %c0_4] : memref<1x1024xf32, #tpu.memory_space<vmem>>, vector<1x1024xf32>
    %5 = vector.broadcast %4 : vector<1x1024xf32> to vector<16x1024xf32>
    %6 = arith.addf %3, %5 : vector<16x1024xf32>
    %cst_5 = arith.constant 0.000000e+00 : f32
    %7 = vector.broadcast %cst_5 : f32 to vector<16x1024xf32>
    %8 = arith.maximumf %6, %7 : vector<16x1024xf32>
    %9 = arith.truncf %8 : vector<16x1024xf32> to vector<16x1024xbf16>
    %c0_6 = arith.constant 0 : index
    %c0_7 = arith.constant 0 : index
    %10 = vector.load %arg4[%c0_6, %c0_7] : memref<1024x128xbf16, #tpu.memory_space<vmem>>, vector<1024x128xbf16>
    %cst_8 = arith.constant dense<0.000000e+00> : vector<16x128xf32>
    %11 = tpu.matmul %9, %10, %cst_8 {dimension_numbers = #tpu.dot_dimension_numbers<[1], [0], [0], [1], [0, 0, 1, 1], [], []>} : vector<16x1024xbf16>, vector<1024x128xbf16>, vector<16x128xf32> -> vector<16x128xf32>
    %c0_9 = arith.constant 0 : index
    %c0_10 = arith.constant 0 : index
    %12 = vector.load %arg5[%c0_9, %c0_10] : memref<1x128xf32, #tpu.memory_space<vmem>>, vector<1x128xf32>
    %13 = vector.broadcast %12 : vector<1x128xf32> to vector<16x128xf32>
    %14 = arith.addf %11, %13 : vector<16x128xf32>
    %c0_11 = arith.constant 0 : index
    %c0_12 = arith.constant 0 : index
    %15 = vector.load %arg6[%c0_11, %c0_12] : memref<16x128xf32, #tpu.memory_space<vmem>>, vector<16x128xf32>
    tpu.vector_store %arg6[%c0_11, %c0_12], %14 {strides = array<i32>} : memref<16x128xf32, #tpu.memory_space<vmem>>, vector<16x128xf32>,
    return
  }
  func.func @transform_0(%arg0: i32) -> (i32, i32) {
    %c0_i32 = arith.constant 0 : i32
    %c0_i32_0 = arith.constant 0 : i32
    return %arg0, %c0_i32 : i32, i32
  }
  func.func @transform_1(%arg0: i32) -> (i32, i32) {
    %c0_i32 = arith.constant 0 : i32
    %c0_i32_0 = arith.constant 0 : i32
    %c0_i32_1 = arith.constant 0 : i32
    return %c0_i32, %c0_i32_0 : i32, i32
  }
  func.func @transform_2(%arg0: i32) -> (i32, i32) {
    %c0_i32 = arith.constant 0 : i32
    %c0_i32_0 = arith.constant 0 : i32
    %c0_i32_1 = arith.constant 0 : i32
    return %c0_i32, %c0_i32_0 : i32, i32
  }
  func.func @transform_3(%arg0: i32) -> (i32, i32) {
    %c0_i32 = arith.constant 0 : i32
    %c0_i32_0 = arith.constant 0 : i32
    %c0_i32_1 = arith.constant 0 : i32
    return %c0_i32, %c0_i32_0 : i32, i32
  }
  func.func @transform_4(%arg0: i32) -> (i32, i32) {
    %c0_i32 = arith.constant 0 : i32
    %c0_i32_0 = arith.constant 0 : i32
    %c0_i32_1 = arith.constant 0 : i32
    return %c0_i32, %c0_i32_0 : i32, i32
  }
  func.func @transform_5(%arg0: i32) -> (i32, i32) {
    %c0_i32 = arith.constant 0 : i32
    %c0_i32_0 = arith.constant 0 : i32
    return %arg0, %c0_i32 : i32, i32
  }
}

</mosaic_0001>

<bundles_post_ra>
// kernel: mlp_apply.1
= control target key start
LH: loop header
LB: loop body
LE: loop exit
PB: predicated region body
PF: predicated region fallthrough
CT: control target
= control target key end

     0   :  { %v1617_v3 = vmov 0   ;;  %s2080_s1 = inlined_call_operand.vmem [shape: bf16[128,1024], index: 1, kind: input, shape index: {}]   ;;  %s2081_s3 = inlined_call_operand.vmem [shape: bf16[1024,128], index: 3, kind: input, shape index: {}]   ;;  %s2082_s0 = inlined_call_operand.vmem [shape: f32[16,128], index: 0, kind: input, shape index: {}]   ;;  %s2083_s2 = inlined_call_operand.vmem [shape: f32[1,1024], index: 2, kind: input, shape index: {}]   ;;  %s2084_s4 = inlined_call_operand.vmem [shape: f32[1,128], index: 4, kind: input, shape index: {}]   ;;  %s2085_s5 = inlined_call_operand.vmem [shape: f32[16,128], index: 5, kind: output, shape index: {}]  }
   0x1   :  { %v24_v0 = vld [vmem:[%s2080_s1] sm:$0xff]  ;;  %v25_v2 = vld [vmem:[%s2080_s1 + $0x8] sm:$0xff]  ;;  %482 = vmatprep.mubr.bf16.mxu0 %v1617_v3  ;;  %525 = vmatprep.mubr.bf16.mxu1 %v1617_v3  ;;  %v26_v60 = vld [vmem:[%s2080_s1 + $0x10] sm:$0xff] }
   0x2   :  { %v28_v1 = vld [vmem:[%s2080_s1 + $0x20] sm:$0xff]  ;;  %v29_v5 = vld [vmem:[%s2080_s1 + $0x28] sm:$0xff]  ;;  %v30_v63 = vld [vmem:[%s2080_s1 + $0x30] sm:$0xff] }
   0x3   :  { %v1336_v4 = vcombine.high %v24_v0, %v28_v1  ;;  %v1335_v6 = vcombine.low %v24_v0, %v28_v1  ;;  %v32_v7 = vld [vmem:[%s2080_s1 + $0x40] sm:$0xff]  ;;  %v1338_v9 = vcombine.high %v25_v2, %v29_v5  ;;  %v1337_v10 = vcombine.low %v25_v2, %v29_v5  ;;  %v33_v12 = vld [vmem:[%s2080_s1 + $0x48] sm:$0xff]  ;;  %v31_v5 = vld [vmem:[%s2080_s1 + $0x38] sm:$0xff] }
   0x4   :  { %v36_v8 = vld [vmem:[%s2080_s1 + $0x60] sm:$0xff]  ;;  %v37_v13 = vld [vmem:[%s2080_s1 + $0x68] sm:$0xff] }
   0x5   :  { %v1344_v11 = vcombine.high %v32_v7, %v36_v8  ;;  %v40_v14 = vld [vmem:[%s2080_s1 + $0x80] sm:$0xff]  ;;  %450 = vmatprep.subr.bf16.mxu0 %v1336_v4  ;;  %v1346_v15 = vcombine.high %v33_v12, %v37_v13  ;;  %v41_v17 = vld [vmem:[%s2080_s1 + $0x88] sm:$0xff]  ;;  %493 = vmatprep.subr.bf16.mxu1 %v1338_v9  ;;  %v1343_v19 = vcombine.low %v32_v7, %v36_v8  ;;  %v27_v4 = vld [vmem:[%s2080_s1 + $0x18] sm:$0xff] }
   0x6   :  { %v44_v16 = vld [vmem:[%s2080_s1 + $0xa0] sm:$0xff]  ;;  %v45_v18 = vld [vmem:[%s2080_s1 + $0xa8] sm:$0xff]  ;;  %451 = vmatpush1.bf16.msra.mxu0 %v1335_v6  ;;  %494 = vmatpush1.bf16.msra.mxu1 %v1337_v10  ;;  %v1345_v20 = vcombine.low %v33_v12, %v37_v13  ;;  %v34_v7 = vld [vmem:[%s2080_s1 + $0x50] sm:$0xff]  ;;  %v1340_v9 = vcombine.high %v26_v60, %v30_v63 }
   0x7   :  { %452 = vmatprep.subr.bf16.mxu0 %v1344_v11  ;;  %v1352_v21 = vcombine.high %v40_v14, %v44_v16  ;;  %495 = vmatprep.subr.bf16.mxu1 %v1346_v15  ;;  %v1354_v22 = vcombine.high %v41_v17, %v45_v18  ;;  %v48_v23 = vld [vmem:[%s2080_s1 + $0xc0] sm:$0xff]  ;;  %v49_v25 = vld [vmem:[%s2080_s1 + $0xc8] sm:$0xff]  ;;  %v1351_v27 = vcombine.low %v40_v14, %v44_v16  ;;  %v38_v10 = vld [vmem:[%s2080_s1 + $0x70] sm:$0xff] }
   0x8   :  { %v52_v24 = vld [vmem:[%s2080_s1 + $0xe0] sm:$0xff]  ;;  %v53_v26 = vld [vmem:[%s2080_s1 + $0xe8] sm:$0xff]  ;;  %v1353_v28 = vcombine.low %v41_v17, %v45_v18  ;;  %v1342_v11 = vcombine.high %v27_v4, %v31_v5  ;;  %v35_v12 = vld [vmem:[%s2080_s1 + $0x58] sm:$0xff]  ;;  %v1339_v15 = vcombine.low %v26_v60, %v30_v63  ;;  %v1341_v17 = vcombine.low %v27_v4, %v31_v5 }
   0x9   :  { %v1360_v29 = vcombine.high %v48_v23, %v52_v24  ;;  %v1362_v30 = vcombine.high %v49_v25, %v53_v26  ;;  %v56_v31 = vld [vmem:[%s2080_s1 + $0x100] sm:$0xff]  ;;  %v57_v33 = vld [vmem:[%s2080_s1 + $0x108] sm:$0xff]  ;;  %v1359_v35 = vcombine.low %v48_v23, %v52_v24  ;;  %v1361_v36 = vcombine.low %v49_v25, %v53_v26  ;;  %v39_v14 = vld [vmem:[%s2080_s1 + $0x78] sm:$0xff] }
   0xa   :  { %453 = vmatpush1.bf16.msra.mxu0 %v1343_v19  ;;  %496 = vmatpush1.bf16.msra.mxu1 %v1345_v20  ;;  %v60_v32 = vld [vmem:[%s2080_s1 + $0x120] sm:$0xff]  ;;  %v61_v34 = vld [vmem:[%s2080_s1 + $0x128] sm:$0xff]  ;;  %v42_v16 = vld [vmem:[%s2080_s1 + $0x90] sm:$0xff]  ;;  %v1348_v18 = vcombine.high %v34_v7, %v38_v10  ;;  %v1350_v20 = vcombine.high %v35_v12, %v39_v14  ;;  %v1347_v23 = vcombine.low %v34_v7, %v38_v10 }
   0xb   :  { %454 = vmatprep.subr.bf16.mxu0 %v1352_v21  ;;  %497 = vmatprep.subr.bf16.mxu1 %v1354_v22  ;;  %v1368_v37 = vcombine.high %v56_v31, %v60_v32  ;;  %v1370_v38 = vcombine.high %v57_v33, %v61_v34  ;;  %v64_v39 = vld [vmem:[%s2080_s1 + $0x140] sm:$0xff]  ;;  %v65_v41 = vld [vmem:[%s2080_s1 + $0x148] sm:$0xff]  ;;  %v1367_v43 = vcombine.low %v56_v31, %v60_v32  ;;  %v46_v19 = vld [vmem:[%s2080_s1 + $0xb0] sm:$0xff] }
   0xc   :  { %v68_v40 = vld [vmem:[%s2080_s1 + $0x160] sm:$0xff]  ;;  %v69_v42 = vld [vmem:[%s2080_s1 + $0x168] sm:$0xff]  ;;  %v1369_v44 = vcombine.low %v57_v33, %v61_v34  ;;  %v43_v21 = vld [vmem:[%s2080_s1 + $0x98] sm:$0xff]  ;;  %v1349_v25 = vcombine.low %v35_v12, %v39_v14  ;;  %v1356_v26 = vcombine.high %v42_v16, %v46_v19  ;;  %v1355_v31 = vcombine.low %v42_v16, %v46_v19 }
   0xd   :  { %v1376_v45 = vcombine.high %v64_v39, %v68_v40  ;;  %v1378_v46 = vcombine.high %v65_v41, %v69_v42  ;;  %v72_v47 = vld [vmem:[%s2080_s1 + $0x180] sm:$0xff]  ;;  %v73_v49 = vld [vmem:[%s2080_s1 + $0x188] sm:$0xff]  ;;  %v1375_v51 = vcombine.low %v64_v39, %v68_v40  ;;  %v1377_v52 = vcombine.low %v65_v41, %v69_v42  ;;  %v47_v22 = vld [vmem:[%s2080_s1 + $0xb8] sm:$0xff] }
   0xe   :  { %455 = vmatpush1.bf16.msra.mxu0 %v1351_v27  ;;  %498 = vmatpush1.bf16.msra.mxu1 %v1353_v28  ;;  %v76_v48 = vld [vmem:[%s2080_s1 + $0x1a0] sm:$0xff]  ;;  %v77_v50 = vld [vmem:[%s2080_s1 + $0x1a8] sm:$0xff]  ;;  %v50_v24 = vld [vmem:[%s2080_s1 + $0xd0] sm:$0xff]  ;;  %v1358_v28 = vcombine.high %v43_v21, %v47_v22  ;;  %v1357_v33 = vcombine.low %v43_v21, %v47_v22 }
   0xf   :  { %456 = vmatprep.subr.bf16.mxu0 %v1360_v29  ;;  %499 = vmatprep.subr.bf16.mxu1 %v1362_v30  ;;  %v1384_v53 = vcombine.high %v72_v47, %v76_v48  ;;  %v80_v54 = vld [vmem:[%s2080_s1 + $0x1c0] sm:$0xff]  ;;  %v1386_v56 = vcombine.high %v73_v49, %v77_v50  ;;  %v81_v57 = vld [vmem:[%s2080_s1 + $0x1c8] sm:$0xff]  ;;  %v1383_v59 = vcombine.low %v72_v47, %v76_v48  ;;  %v54_v27 = vld [vmem:[%s2080_s1 + $0xf0] sm:$0xff] }
  0x10   :  { %v84_v55 = vld [vmem:[%s2080_s1 + $0x1e0] sm:$0xff]  ;;  %v85_v58 = vld [vmem:[%s2080_s1 + $0x1e8] sm:$0xff]  ;;  %v1385_v61 = vcombine.low %v73_v49, %v77_v50  ;;  %v51_v29 = vld [vmem:[%s2080_s1 + $0xd8] sm:$0xff]  ;;  %v1364_v34 = vcombine.high %v50_v24, %v54_v27 }
  0x11   :  { %v1392_v62 = vcombine.high %v80_v54, %v84_v55  ;;  %v1394_v0 = vcombine.high %v81_v57, %v85_v58  ;;  %v21_v1 = vld [vmem:[%s2082_s0] sm:$0xff]  ;;  %v22_v2 = vld [vmem:[%s2082_s0 + $0x8] sm:$0xff]  ;;  %v1391_v6 = vcombine.low %v80_v54, %v84_v55  ;;  %v1393_v8 = vcombine.low %v81_v57, %v85_v58  ;;  %v55_v30 = vld [vmem:[%s2080_s1 + $0xf8] sm:$0xff] }
  0x12   :  { %457 = vmatpush1.bf16.msra.mxu0 %v1359_v35  ;;  %500 = vmatpush1.bf16.msra.mxu1 %v1361_v36  ;;  %v1773_v13 = vpack.c.bf16 %v22_v2, %v21_v1  ;;  %v58_v32 = vld [vmem:[%s2080_s1 + $0x110] sm:$0xff]  ;;  %v1366_v36 = vcombine.high %v51_v29, %v55_v30  ;;  %v1365_v41 = vcombine.low %v51_v29, %v55_v30  ;;  %v87_v60 = vld [vmem:[%s2080_s1 + $0x1f8] sm:$0xff]  ;;  %v1553_v2 = vld [vmem:[%s2081_s3 + $0x40] sm:$0xff]  }
  0x13   :  { %458 = vmatprep.subr.bf16.mxu0 %v1368_v37  ;;  %501 = vmatprep.subr.bf16.mxu1 %v1370_v38  ;;  %v62_v35 = vld [vmem:[%s2080_s1 + $0x130] sm:$0xff]  ;;  %v63_v37 = vld [vmem:[%s2080_s1 + $0x138] sm:$0xff]  ;;  %v1363_v38 = vcombine.low %v50_v24, %v54_v27  ;;  %v1554_v5 = vld [vmem:[%s2081_s3 + $0xc0] sm:$0xff]  }
  0x14   :  { %v66_v39 = vld [vmem:[%s2080_s1 + $0x150] sm:$0xff]  ;;  %v1372_v42 = vcombine.high %v58_v32, %v62_v35  ;;  %v1555_v7 = vld [vmem:[%s2081_s3] sm:$0xff]   ;;  %v1558_v10 = vld [vmem:[%s2081_s3 + $0xc8] sm:$0xff]  }
  0x15   :  { %v70_v40 = vld [vmem:[%s2080_s1 + $0x170] sm:$0xff]  ;;  %v1560_v12 = vld [vmem:[%s2081_s3 + $0x88] sm:$0xff]   ;;  %v1567_v19 = vld [vmem:[%s2081_s3 + $0x18] sm:$0xff]  }
  0x16   :  { %459 = vmatpush1.bf16.msra.mxu0 %v1367_v43  ;;  %502 = vmatpush1.bf16.msra.mxu1 %v1369_v44  ;;  %v67_v43 = vld [vmem:[%s2080_s1 + $0x158] sm:$0xff]  ;;  %v74_v47 = vld [vmem:[%s2080_s1 + $0x190] sm:$0xff]  ;;  %v1380_v50 = vcombine.high %v66_v39, %v70_v40  ;;  %v1379_v54 = vcombine.low %v66_v39, %v70_v40  ;;  %v1569_v21 = vld [vmem:[%s2081_s3 + $0x60] sm:$0xff]  }
  0x17   :  { %460 = vmatprep.subr.bf16.mxu0 %v1376_v45  ;;  %503 = vmatprep.subr.bf16.mxu1 %v1378_v46  ;;  %v71_v44 = vld [vmem:[%s2080_s1 + $0x178] sm:$0xff]  ;;  %v1371_v46 = vcombine.low %v58_v32, %v62_v35  ;;  %v78_v48 = vld [vmem:[%s2080_s1 + $0x1b0] sm:$0xff]  ;;  %v1570_v22 = vld [vmem:[%s2081_s3 + $0xe0] sm:$0xff]  }
  0x18   :  { %v82_v55 = vld [vmem:[%s2080_s1 + $0x1d0] sm:$0xff]  ;;  %v1381_v57 = vcombine.low %v67_v43, %v71_v44  ;;  %v1388_v58 = vcombine.high %v74_v47, %v78_v48  ;;  %v1572_v24 = vld [vmem:[%s2081_s3 + $0xa0] sm:$0xff]   ;;  %v1575_v27 = vld [vmem:[%s2081_s3 + $0x28] sm:$0xff]  }
  0x19   :  { %v1561_v14 = vld [vmem:[%s2081_s3 + $0x50] sm:$0xff]   ;;  %v1583_v35 = vld [vmem:[%s2081_s3 + $0x38] sm:$0xff]  }
  0x1a   :  { %461 = vmatpush1.bf16.msra.mxu0 %v1375_v51  ;;  %504 = vmatpush1.bf16.msra.mxu1 %v1377_v52  ;;  %v75_v51 = vld [vmem:[%s2080_s1 + $0x198] sm:$0xff]  ;;  %v1563_v16 = vld [vmem:[%s2081_s3 + $0x10] sm:$0xff]  }
  0x1b   :  { %462 = vmatprep.subr.bf16.mxu0 %v1384_v53  ;;  %505 = vmatprep.subr.bf16.mxu1 %v1386_v56  ;;  %v79_v52 = vld [vmem:[%s2080_s1 + $0x1b8] sm:$0xff]  ;;  %v1382_v53 = vcombine.high %v67_v43, %v71_v44  ;;  %v86_v56 = vld [vmem:[%s2080_s1 + $0x1f0] sm:$0xff] }
  0x1c   :  { %v1389_v63 = vcombine.low %v75_v51, %v79_v52  ;;  %v1395_v4 = vcombine.low %v82_v55, %v86_v56  ;;  %v1577_v29 = vld [vmem:[%s2081_s3 + $0x70] sm:$0xff]  }
  0x1d   :  { %v1578_v30 = vld [vmem:[%s2081_s3 + $0xf0] sm:$0xff]  }
  0x1e   :  { %463 = vmatpush1.bf16.msra.mxu0 %v1383_v59  ;;  %506 = vmatpush1.bf16.msra.mxu1 %v1385_v61  ;;  %v83_v59 = vld [vmem:[%s2080_s1 + $0x1d8] sm:$0xff]  ;;  %v1390_v61 = vcombine.high %v75_v51, %v79_v52  ;;  %v1580_v32 = vld [vmem:[%s2081_s3 + $0xb0] sm:$0xff]  }
  0x1f   :  { %464 = vmatprep.subr.bf16.mxu0 %v1392_v62  ;;  %507 = vmatprep.subr.bf16.mxu1 %v1394_v0  ;;  %v1387_v62 = vcombine.low %v74_v47, %v78_v48  ;;  %v1396_v0 = vcombine.high %v82_v55, %v86_v56  ;;  %v1398_v1 = vcombine.high %v83_v59, %v87_v60 }
  0x22   :  { %465 = vmatpush1.bf16.msra.mxu0 %v1391_v6  ;;  %508 = vmatpush1.bf16.msra.mxu1 %v1393_v8  ;;  %v1397_v6 = vcombine.low %v83_v59, %v87_v60  ;;  %v1556_v8 = vld [vmem:[%s2081_s3 + $0x80] sm:$0xff]  }
  0x23   :  { %536 = vmatprep.subr.bf16.mxu0 %v1340_v9  ;;  %579 = vmatprep.subr.bf16.mxu1 %v1342_v11  ;;  %v1557_v9 = vld [vmem:[%s2081_s3 + $0x48] sm:$0xff]  }
  0x24   :  { %v1559_v11 = vld [vmem:[%s2081_s3 + $0x8] sm:$0xff]  }
  0x25   :  { %483 = vmatmul.mubr.bf16.vlgmr.msra.gmra.mrb[0].mxu0 %v1773_v13  ;;  %526 = vmatmul.mubr.bf16.vlgmr.msra.gmra.mrb[0].mxu1 %v1773_v13 }
  0x26   :  { %537 = vmatpush1.bf16.msra.mxu0 %v1339_v15  ;;  %580 = vmatpush1.bf16.msra.mxu1 %v1341_v17  ;;  %v1562_v15 = vld [vmem:[%s2081_s3 + $0xd0] sm:$0xff]  }
  0x27   :  { %538 = vmatprep.subr.bf16.mxu0 %v1348_v18  ;;  %581 = vmatprep.subr.bf16.mxu1 %v1350_v20  ;;  %v1564_v17 = vld [vmem:[%s2081_s3 + $0x90] sm:$0xff]   ;;  %v1566_v18 = vld [vmem:[%s2081_s3 + $0xd8] sm:$0xff]  }
  0x28   :  { %568 = vmatprep.mubr.bf16.mxu0 %v1617_v3  ;;  %611 = vmatprep.mubr.bf16.mxu1 %v1617_v3  ;;  %v59_v3 = vld [vmem:[%s2080_s1 + $0x118] sm:$0xff] }
  0x29   :  { %v1374_v45 = vcombine.high %v59_v3, %v63_v37  ;;  %v1373_v49 = vcombine.low %v59_v3, %v63_v37  ;;  %v1568_v20 = vld [vmem:[%s2081_s3 + $0x98] sm:$0xff]   ;;  %v1585_v3 = vld [vmem:[%s2081_s3 + $0x140] sm:$0xff]  }
  0x2a   :  { %539 = vmatpush1.bf16.msra.mxu0 %v1347_v23  ;;  %582 = vmatpush1.bf16.msra.mxu1 %v1349_v25  ;;  %v1571_v23 = vld [vmem:[%s2081_s3 + $0x20] sm:$0xff]   ;;  %v1573_v25 = vld [vmem:[%s2081_s3 + $0x68] sm:$0xff]  }
  0x2b   :  { %540 = vmatprep.subr.bf16.mxu0 %v1356_v26  ;;  %583 = vmatprep.subr.bf16.mxu1 %v1358_v28  ;;  %v1574_v26 = vld [vmem:[%s2081_s3 + $0xe8] sm:$0xff]   ;;  %v1586_v37 = vld [vmem:[%s2081_s3 + $0x1c0] sm:$0xff]  }
  0x2c   :  { %v1576_v28 = vld [vmem:[%s2081_s3 + $0xa8] sm:$0xff]  }
  0x2e   :  { %541 = vmatpush1.bf16.msra.mxu0 %v1355_v31  ;;  %584 = vmatpush1.bf16.msra.mxu1 %v1357_v33  ;;  %v1579_v31 = vld [vmem:[%s2081_s3 + $0x30] sm:$0xff]   ;;  %v1581_v33 = vld [vmem:[%s2081_s3 + $0x78] sm:$0xff]  }
  0x2f   :  { %542 = vmatprep.subr.bf16.mxu0 %v1364_v34  ;;  %585 = vmatprep.subr.bf16.mxu1 %v1366_v36  ;;  %v1582_v34 = vld [vmem:[%s2081_s3 + $0xf8] sm:$0xff]  }
  0x30   :  { %v1584_v36 = vld [vmem:[%s2081_s3 + $0xb8] sm:$0xff]  }
  0x32   :  { %543 = vmatpush1.bf16.msra.mxu0 %v1363_v38  ;;  %586 = vmatpush1.bf16.msra.mxu1 %v1365_v41  ;;  %v90_v38 = vlaneseq  ;;  %v1964_v41 = vld [vmem:[%s2083_s2] sm:$0xff] }
  0x33   :  { %544 = vmatprep.subr.bf16.mxu0 %v1372_v42  ;;  %587 = vmatprep.subr.bf16.mxu1 %v1374_v45 }
  0x34   :  { %v1958_v39 = vshrl.u32 %v90_v38, 7 }
  0x36   :  { %545 = vmatpush1.bf16.msra.mxu0 %v1371_v46  ;;  %588 = vmatpush1.bf16.msra.mxu1 %v1373_v49  ;;  %v92_v40 = vsub.s32 0, %v1958_v39  ;;  %v100_v42 = vsub.s32 2, %v1958_v39  ;;  %v96_v43 = vsub.s32 1, %v1958_v39  ;;  %v104_v44 = vsub.s32 3, %v1958_v39 }
  0x37   :  { %546 = vmatprep.subr.bf16.mxu0 %v1380_v50  ;;  %589 = vmatprep.subr.bf16.mxu1 %v1382_v53 }
  0x38   :  { %v93_v45 = vrot.slane %v1964_v41, %v92_v40  ;;  %v101_v46 = vrot.slane %v1964_v41, %v100_v42  ;;  %v97_v47 = vrot.slane %v1964_v41, %v96_v43  ;;  %v105_v48 = vrot.slane %v1964_v41, %v104_v44  ;;  %v1608_v40 = vld [vmem:[%s2081_s3 + $0x1a8] sm:$0xff]   ;;  %v1609_v42 = vld [vmem:[%s2081_s3 + $0x170] sm:$0xff]  }
  0x39   :  { %v1610_v44 = vld [vmem:[%s2081_s3 + $0x1f0] sm:$0xff]  }
  0x3a   :  { %547 = vmatpush1.bf16.msra.mxu0 %v1379_v54  ;;  %590 = vmatpush1.bf16.msra.mxu1 %v1381_v57 }
  0x3b   :  { %548 = vmatprep.subr.bf16.mxu0 %v1388_v58  ;;  %591 = vmatprep.subr.bf16.mxu1 %v1390_v61 }
  0x3e   :  { %549 = vmatpush1.bf16.msra.mxu0 %v1387_v62  ;;  %592 = vmatpush1.bf16.msra.mxu1 %v1389_v63 }
  0x3f   :  { %550 = vmatprep.subr.bf16.mxu0 %v1396_v0  ;;  %593 = vmatprep.subr.bf16.mxu1 %v1398_v1 }
  0x42   :  { %551 = vmatpush1.bf16.msra.mxu0 %v1395_v4  ;;  %594 = vmatpush1.bf16.msra.mxu1 %v1397_v6 }
  0x43   :  { %1464 = vmatprep.subr.bf16.mxu0 %v1553_v2  ;;  %1486 = vmatprep.subr.bf16.mxu1 %v1554_v5 }
  0x45   :  { %569 = vmatmul.mubr.bf16.vlgmr.msra.gmra.mrb[4].mxu0 %v1773_v13  ;;  %612 = vmatmul.mubr.bf16.vlgmr.msra.gmra.mrb[4].mxu1 %v1773_v13  ;;  %v1565_v13 = vld [vmem:[%s2081_s3 + $0x58] sm:$0xff]  }
  0x46   :  { %1465 = vmatpush3.bf16.msra.mxu0 %v1555_v7  ;;  %1487 = vmatpush3.bf16.msra.mxu1 %v1556_v8 }
  0x47   :  { %1466 = vmatprep.subr.bf16.mxu0 %v1557_v9  ;;  %1488 = vmatprep.subr.bf16.mxu1 %v1558_v10 }
  0x4a   :  { %1467 = vmatpush3.bf16.msra.mxu0 %v1559_v11  ;;  %1489 = vmatpush3.bf16.msra.mxu1 %v1560_v12 }
  0x4b   :  { %1468 = vmatprep.subr.bf16.mxu0 %v1561_v14  ;;  %1490 = vmatprep.subr.bf16.mxu1 %v1562_v15  ;;  %v1587_v14 = vld [vmem:[%s2081_s3 + $0x100] sm:$0xff]  }
  0x4e   :  { %1469 = vmatpush3.bf16.msra.mxu0 %v1563_v16  ;;  %1491 = vmatpush3.bf16.msra.mxu1 %v1564_v17  ;;  %v1588_v16 = vld [vmem:[%s2081_s3 + $0x180] sm:$0xff]   ;;  %v1589_v17 = vld [vmem:[%s2081_s3 + $0x148] sm:$0xff]  }
  0x4f   :  { %1470 = vmatprep.subr.bf16.mxu0 %v1565_v13  ;;  %1492 = vmatprep.subr.bf16.mxu1 %v1566_v18  ;;  %v1590_v13 = vld [vmem:[%s2081_s3 + $0x1c8] sm:$0xff]  }
  0x50   :  { %v1591_v18 = vld [vmem:[%s2081_s3 + $0x108] sm:$0xff]  }
  0x52   :  { %1471 = vmatpush3.bf16.msra.mxu0 %v1567_v19  ;;  %1493 = vmatpush3.bf16.msra.mxu1 %v1568_v20  ;;  %v1592_v19 = vld [vmem:[%s2081_s3 + $0x188] sm:$0xff]   ;;  %v1593_v20 = vld [vmem:[%s2081_s3 + $0x150] sm:$0xff]  }
  0x53   :  { %1472 = vmatprep.subr.bf16.mxu0 %v1569_v21  ;;  %1494 = vmatprep.subr.bf16.mxu1 %v1570_v22  ;;  %v1594_v21 = vld [vmem:[%s2081_s3 + $0x1d0] sm:$0xff]  }
  0x54   :  { %v1595_v22 = vld [vmem:[%s2081_s3 + $0x110] sm:$0xff]  }
  0x56   :  { %1473 = vmatpush3.bf16.msra.mxu0 %v1571_v23  ;;  %1495 = vmatpush3.bf16.msra.mxu1 %v1572_v24  ;;  %v1596_v23 = vld [vmem:[%s2081_s3 + $0x190] sm:$0xff]   ;;  %v1597_v24 = vld [vmem:[%s2081_s3 + $0x158] sm:$0xff]  }
  0x57   :  { %1474 = vmatprep.subr.bf16.mxu0 %v1573_v25  ;;  %1496 = vmatprep.subr.bf16.mxu1 %v1574_v26  ;;  %v1598_v25 = vld [vmem:[%s2081_s3 + $0x1d8] sm:$0xff]  }
  0x58   :  { %v1599_v26 = vld [vmem:[%s2081_s3 + $0x118] sm:$0xff]  }
  0x5a   :  { %1475 = vmatpush3.bf16.msra.mxu0 %v1575_v27  ;;  %1497 = vmatpush3.bf16.msra.mxu1 %v1576_v28  ;;  %v1600_v27 = vld [vmem:[%s2081_s3 + $0x198] sm:$0xff]   ;;  %v1601_v28 = vld [vmem:[%s2081_s3 + $0x160] sm:$0xff]  }
  0x5b   :  { %1476 = vmatprep.subr.bf16.mxu0 %v1577_v29  ;;  %1498 = vmatprep.subr.bf16.mxu1 %v1578_v30  ;;  %v1602_v29 = vld [vmem:[%s2081_s3 + $0x1e0] sm:$0xff]  }
  0x5c   :  { %v1603_v30 = vld [vmem:[%s2081_s3 + $0x120] sm:$0xff]  }
  0x5e   :  { %1477 = vmatpush3.bf16.msra.mxu0 %v1579_v31  ;;  %1499 = vmatpush3.bf16.msra.mxu1 %v1580_v32  ;;  %v1604_v31 = vld [vmem:[%s2081_s3 + $0x1a0] sm:$0xff]   ;;  %v1605_v32 = vld [vmem:[%s2081_s3 + $0x168] sm:$0xff]  }
  0x5f   :  { %1478 = vmatprep.subr.bf16.mxu0 %v1581_v33  ;;  %1500 = vmatprep.subr.bf16.mxu1 %v1582_v34  ;;  %v108_v33 = vsub.s32 4, %v1958_v39  ;;  %v1606_v34 = vld [vmem:[%s2081_s3 + $0x1e8] sm:$0xff]  }
  0x61   :  { %v109_v38 = vrot.slane %v1964_v41, %v108_v33 }
  0x62   :  { %1479 = vmatpush3.bf16.msra.mxu0 %v1583_v35  ;;  %1501 = vmatpush3.bf16.msra.mxu1 %v1584_v36  ;;  %v116_v35 = vsub.s32 6, %v1958_v39  ;;  %v112_v36 = vsub.s32 5, %v1958_v39 }
  0x63   :  { %1508 = vmatprep.subr.bf16.mxu0 %v1585_v3  ;;  %1530 = vmatprep.subr.bf16.mxu1 %v1586_v37  ;;  %v120_v3 = vsub.s32 7, %v1958_v39  ;;  %v1607_v37 = vld [vmem:[%s2081_s3 + $0x128] sm:$0xff]  }
  0x64   :  { %v117_v39 = vrot.slane %v1964_v41, %v116_v35  ;;  %v113_v43 = vrot.slane %v1964_v41, %v112_v36 }
  0xf8   :  { %v484_v49 = vpop.f32.mrb[0].mxu0  ;;  %v527_v51 = vpop.f32.mrb[0].mxu1 }
  0xf9   :  { %v485_v50 = vadd.f32 %v484_v49, %v93_v45  ;;  %v486_v52 = vpop.f32.mrb[1].mxu0  ;;  %v528_v53 = vadd.f32 %v527_v51, %v101_v46  ;;  %v529_v55 = vpop.f32.mrb[1].mxu1  ;;  %v1612_v51 = vld [vmem:[%s2081_s3 + $0x1b0] sm:$0xff]  }
  0xfa   :  { %v487_v54 = vadd.f32 %v486_v52, %v97_v47  ;;  %v488_v56 = vpop.f32.mrb[2].mxu0  ;;  %v530_v58 = vadd.f32 %v529_v55, %v105_v48  ;;  %v531_v60 = vpop.f32.mrb[2].mxu1  ;;  %v1613_v52 = vld [vmem:[%s2081_s3 + $0x178] sm:$0xff]  }
  0xfb   :  { %v622_v57 = vmax.f32 %v485_v50, 0.0  ;;  %v489_v59 = vadd.f32 %v488_v56, %v93_v45  ;;  %v490_v61 = vpop.f32.mrb[3].mxu0  ;;  %v624_v62 = vmax.f32 %v528_v53, 0.0  ;;  %v532_v63 = vadd.f32 %v531_v60, %v101_v46  ;;  %v533_v1 = vpop.f32.mrb[3].mxu1  ;;  %v1614_v56 = vld [vmem:[%s2081_s3 + $0x1f8] sm:$0xff]  }
  0xfc   :  { %v491_v0 = vadd.f32 %v490_v61, %v97_v47  ;;  %v625_v2 = vmax.f32 %v530_v58, 0.0  ;;  %v534_v5 = vadd.f32 %v533_v1, %v105_v48  ;;  %v623_v6 = vmax.f32 %v487_v54, 0.0  ;;  %v1611_v47 = vld [vmem:[%s2081_s3 + $0x130] sm:$0xff]   ;;  %v1615_v1 = vld [vmem:[%s2081_s3 + $0x138] sm:$0xff]  }
  0xfd   :  { %v630_v4 = vmax.f32 %v489_v59, 0.0  ;;  %v632_v7 = vmax.f32 %v532_v63, 0.0  ;;  %v121_v45 = vrot.slane %v1964_v41, %v120_v3 }
  0xfe   :  { %v631_v8 = vmax.f32 %v491_v0, 0.0  ;;  %v633_v10 = vmax.f32 %v534_v5, 0.0 }
  0xff   :  { %v638_v9 = vpack.c.bf16 %v630_v4, %v622_v57  ;;  %v640_v11 = vpack.c.bf16 %v632_v7, %v624_v62  ;;  %v1616_v7 = vld [vmem:[%s2081_s3 + $0x1b8] sm:$0xff]  }
 0x100   :  { %v639_v12 = vpack.c.bf16 %v631_v8, %v623_v6  ;;  %v641_v15 = vpack.c.bf16 %v633_v10, %v625_v2 }
 0x102   :  { %1197 = vmatprep.mubr.bf16.mxu0 %v639_v12  ;;  %1238 = vmatprep.mubr.bf16.mxu1 %v641_v15 }
 0x103   :  { %1198 = vmatmul.mubr.bf16.vlgmr.msra.gmra.mrb[8].mxu0 %v638_v9  ;;  %1239 = vmatmul.mubr.bf16.vlgmr.msra.gmra.mrb[8].mxu1 %v640_v11 }
 0x104   :  { %1509 = vmatpush3.bf16.msra.mxu0 %v1587_v14  ;;  %1531 = vmatpush3.bf16.msra.mxu1 %v1588_v16 }
 0x105   :  { %1510 = vmatprep.subr.bf16.mxu0 %v1589_v17  ;;  %1532 = vmatprep.subr.bf16.mxu1 %v1590_v13 }
 0x108   :  { %1511 = vmatpush3.bf16.msra.mxu0 %v1591_v18  ;;  %1533 = vmatpush3.bf16.msra.mxu1 %v1592_v19  ;;  %v1399_v18 = vld [vmem:[%s2084_s4] ss:$0 sm:$0xff] }
 0x109   :  { %1512 = vmatprep.subr.bf16.mxu0 %v1593_v20  ;;  %1534 = vmatprep.subr.bf16.mxu1 %v1594_v21 }
 0x10c   :  { %1513 = vmatpush3.bf16.msra.mxu0 %v1595_v22  ;;  %1535 = vmatpush3.bf16.msra.mxu1 %v1596_v23 }
 0x10d   :  { %1514 = vmatprep.subr.bf16.mxu0 %v1597_v24  ;;  %1536 = vmatprep.subr.bf16.mxu1 %v1598_v25 }
 0x110   :  { %1515 = vmatpush3.bf16.msra.mxu0 %v1599_v26  ;;  %1537 = vmatpush3.bf16.msra.mxu1 %v1600_v27 }
 0x111   :  { %1516 = vmatprep.subr.bf16.mxu0 %v1601_v28  ;;  %1538 = vmatprep.subr.bf16.mxu1 %v1602_v29 }
 0x114   :  { %1517 = vmatpush3.bf16.msra.mxu0 %v1603_v30  ;;  %1539 = vmatpush3.bf16.msra.mxu1 %v1604_v31 }
 0x115   :  { %1518 = vmatprep.subr.bf16.mxu0 %v1605_v32  ;;  %1540 = vmatprep.subr.bf16.mxu1 %v1606_v34 }
 0x118   :  { %v570_v46 = vpop.f32.mrb[4].mxu0  ;;  %1519 = vmatpush3.bf16.msra.mxu0 %v1607_v37  ;;  %v613_v49 = vpop.f32.mrb[4].mxu1  ;;  %1541 = vmatpush3.bf16.msra.mxu1 %v1608_v40 }
 0x119   :  { %v571_v48 = vadd.f32 %v570_v46, %v109_v38  ;;  %v572_v50 = vpop.f32.mrb[5].mxu0  ;;  %1520 = vmatprep.subr.bf16.mxu0 %v1609_v42  ;;  %v614_v41 = vadd.f32 %v613_v49, %v117_v39  ;;  %v615_v54 = vpop.f32.mrb[5].mxu1  ;;  %1542 = vmatprep.subr.bf16.mxu1 %v1610_v44 }
 0x11a   :  { %v573_v53 = vadd.f32 %v572_v50, %v113_v43  ;;  %v574_v55 = vpop.f32.mrb[6].mxu0  ;;  %v616_v57 = vadd.f32 %v615_v54, %v121_v45  ;;  %v617_v59 = vpop.f32.mrb[6].mxu1 }
 0x11b   :  { %v575_v58 = vadd.f32 %v574_v55, %v109_v38  ;;  %v576_v60 = vpop.f32.mrb[7].mxu0  ;;  %v628_v61 = vmax.f32 %v614_v41, 0.0  ;;  %v618_v62 = vadd.f32 %v617_v59, %v117_v39  ;;  %v619_v0 = vpop.f32.mrb[7].mxu1  ;;  %v626_v2 = vmax.f32 %v571_v48, 0.0 }
 0x11c   :  { %v577_v63 = vadd.f32 %v576_v60, %v113_v43  ;;  %1521 = vmatpush3.bf16.msra.mxu0 %v1611_v47  ;;  %v629_v4 = vmax.f32 %v616_v57, 0.0  ;;  %v620_v6 = vadd.f32 %v619_v0, %v121_v45  ;;  %1543 = vmatpush3.bf16.msra.mxu1 %v1612_v51  ;;  %v627_v8 = vmax.f32 %v573_v53, 0.0 }
 0x11d   :  { %v634_v5 = vmax.f32 %v575_v58, 0.0  ;;  %1522 = vmatprep.subr.bf16.mxu0 %v1613_v52  ;;  %v636_v9 = vmax.f32 %v618_v62, 0.0  ;;  %1544 = vmatprep.subr.bf16.mxu1 %v1614_v56 }
 0x11e   :  { %v635_v10 = vmax.f32 %v577_v63, 0.0  ;;  %v637_v12 = vmax.f32 %v620_v6, 0.0 }
 0x11f   :  { %v642_v11 = vpack.c.bf16 %v634_v5, %v626_v2  ;;  %v644_v14 = vpack.c.bf16 %v636_v9, %v628_v61 }
 0x120   :  { %v643_v15 = vpack.c.bf16 %v635_v10, %v627_v8  ;;  %1523 = vmatpush3.bf16.msra.mxu0 %v1615_v1  ;;  %v645_v16 = vpack.c.bf16 %v637_v12, %v629_v4  ;;  %1545 = vmatpush3.bf16.msra.mxu1 %v1616_v7 }
 0x122   :  { %1279 = vmatprep.mubr.bf16.mxu0 %v643_v15  ;;  %1320 = vmatprep.mubr.bf16.mxu1 %v645_v16 }
 0x123   :  { %1280 = vmatmul.mubr.bf16.vlgmr.msra.gmra.mrb[12].mxu0 %v642_v11  ;;  %1321 = vmatmul.mubr.bf16.vlgmr.msra.gmra.mrb[12].mxu1 %v644_v14 }
 0x1d6   :  { %v1480_v17 = vpop.f32.mrb[8].mxu0  ;;  %v1502_v13 = vpop.f32.mrb[8].mxu1 }
 0x1d7   :  { %v1481_v19 = vpop.f32.mrb[9].mxu0  ;;  %v1503_v21 = vpop.f32.mrb[9].mxu1 }
 0x1d8   :  { %v1482_v20 = vadd.f32 %v1481_v19, %v1480_v17  ;;  %v1483_v22 = vpop.f32.mrb[10].mxu0  ;;  %v1504_v23 = vadd.f32 %v1503_v21, %v1502_v13  ;;  %v1505_v24 = vpop.f32.mrb[10].mxu1 }
 0x1d9   :  { %v1484_v25 = vpop.f32.mrb[11].mxu0  ;;  %v1506_v28 = vpop.f32.mrb[11].mxu1 }
 0x1da   :  { %v1200_v26 = vadd.f32 %v1482_v20, %v1399_v18  ;;  %v1485_v27 = vadd.f32 %v1484_v25, %v1483_v22  ;;  %v1507_v29 = vadd.f32 %v1506_v28, %v1505_v24 }
 0x1dc   :  { %v1241_v30 = vadd.f32 %v1504_v23, %v1200_v26  ;;  %v1203_v31 = vadd.f32 %v1485_v27, %v1399_v18 }
 0x1de   :  { %v1244_v32 = vadd.f32 %v1507_v29, %v1203_v31 }
 0x1f6   :  { %v1524_v33 = vpop.f32.mrb[12].mxu0  ;;  %v1546_v34 = vpop.f32.mrb[12].mxu1 }
 0x1f7   :  { %v1525_v35 = vpop.f32.mrb[13].mxu0  ;;  %v1547_v3 = vpop.f32.mrb[13].mxu1 }
 0x1f8   :  { %v1526_v36 = vadd.f32 %v1525_v35, %v1524_v33  ;;  %v1527_v37 = vpop.f32.mrb[14].mxu0  ;;  %v1548_v38 = vadd.f32 %v1547_v3, %v1546_v34  ;;  %v1549_v40 = vpop.f32.mrb[14].mxu1 }
 0x1f9   :  { %v1528_v42 = vpop.f32.mrb[15].mxu0  ;;  %v1550_v44 = vpop.f32.mrb[15].mxu1 }
 0x1fa   :  { %v1282_v39 = vadd.f32 %v1526_v36, %v1241_v30  ;;  %v1529_v43 = vadd.f32 %v1528_v42, %v1527_v37  ;;  %v1551_v45 = vadd.f32 %v1550_v44, %v1549_v40 }
 0x1fc   :  { %v1323_v46 = vadd.f32 %v1548_v38, %v1282_v39  ;;  %v1285_v47 = vadd.f32 %v1529_v43, %v1244_v32 }
 0x1fe   :  { %1329 = vst [vmem:[%s2085_s5] sm:$0xff] %v1323_v46  ;;  %v1326_v48 = vadd.f32 %v1551_v45, %v1285_v47 }
 0x200   :  { %1330 = vst [vmem:[%s2085_s5 + $0x8] sm:$0xff] %v1326_v48 }

</bundles_post_ra>
